<compile_context>
chip_gen: v7x
topology: tpu7x:2x2x1
jax: 0.10.0
libtpu: 0.0.40
codegen_flags: <defaults>
</compile_context>

<pallas_src>
import functools

import jax
import jax.numpy as jnp
import numpy as np
from jax.experimental import pallas as pl
from jax.experimental.pallas import tpu as pltpu

LANE = 128        # pad feature (hidden / output) dims to this -> lane-dense vregs
SUBLANE = 8       # pad the batch (M) dim to a multiple of this
MAX_TILE_M = 256  # M tile for large batches (full-M pass through the 256-wide MXU)


def _round_up(x, m):
    return (x + m - 1) // m * m


def gcn_kernel(x_ref, w1_ref, w23_ref, w4_ref, b_ref, out_ref, *, hp, op):
    """Fused 4-layer MLP on one (TILE_M, K) batch tile.

    x_ref   : (TILE_M, K)  compute dtype (bf16)  flattened adjacencies, K = N*N
    w1_ref  : (K, Hp)      compute dtype          (grid-invariant, resident)
    w23_ref : (2, Hp, Hp)  compute dtype          [w2, w3] stacked (resident)
    w4_ref  : (Hp, Op)     compute dtype          (resident)
    b_ref   : (4, Bp)      f32                    [b1, b2, b3, b4] zero-padded
    out_ref : (TILE_M, Op) out dtype
    """
    cdt = x_ref.dtype
    b = b_ref[...]                                   # (4, Bp) f32, loaded once

    # fc1 + ReLU  (f32 accumulation, activation on the f32 accumulator)
    h = jnp.dot(x_ref[...], w1_ref[...], preferred_element_type=jnp.float32)
    h = jnp.maximum(h + b[0:1, :hp], 0.0).astype(cdt)

    # fc2 + ReLU
    h = jnp.dot(h, w23_ref[0], preferred_element_type=jnp.float32)
    h = jnp.maximum(h + b[1:2, :hp], 0.0).astype(cdt)

    # fc3 + ReLU
    h = jnp.dot(h, w23_ref[1], preferred_element_type=jnp.float32)
    h = jnp.maximum(h + b[2:3, :hp], 0.0).astype(cdt)

    # fc4 (no activation) -> lane-dense store
    y = jnp.dot(h, w4_ref[...], preferred_element_type=jnp.float32) + b[3:4, :op]
    out_ref[...] = y.astype(out_ref.dtype)


def pack_params(params, *, compute_dtype=jnp.bfloat16):
    """Zero-pad feature dims to LANE and pack 9 operands into 4 arrays."""
    (w1, b1), (w2, b2), (w3, b3), (w4, b4) = params
    K, H = w1.shape
    Nout = w4.shape[1]
    Hp = _round_up(H, LANE)
    Op = _round_up(Nout, LANE)
    Bp = max(Hp, Op)

    def pad2(w, rows, cols):
        return jnp.pad(w, ((0, rows - w.shape[0]), (0, cols - w.shape[1])))

    w1p = pad2(w1, K, Hp).astype(compute_dtype)
    w23p = jnp.stack([pad2(w2, Hp, Hp), pad2(w3, Hp, Hp)]).astype(compute_dtype)
    w4p = pad2(w4, Hp, Op).astype(compute_dtype)

    def padb(bvec):
        v = bvec.reshape(-1)
        return jnp.pad(v, (0, Bp - v.shape[0]))

    bp = jnp.stack([padb(b1), padb(b2), padb(b3), padb(b4)]).astype(jnp.float32)
    return (w1p, w23p, w4p, bp), (K, Nout, Hp, Op)


def gcn_forward_batched(adjs, params, *, compute_dtype=jnp.bfloat16,
                        out_dtype=jnp.float32, tile_m=None):
    """Batched forward: adjs (B, N, N) -> (B, N).

    One pallas_call for the whole batch; the batch is tiled along a 1-D
    "parallel" grid with weights resident across all tiles.
    """
    B, N, _ = adjs.shape
    (w1p, w23p, w4p, bp), (K, Nout, Hp, Op) = pack_params(
        params, compute_dtype=compute_dtype)
    assert K == N * N
    Bp_bias = bp.shape[1]

    # Tile choice: small batches -> a single grid step (avoid ~0.35 us/step
    # overhead); larger batches -> 256-row tiles (MXU occupancy, pipelining,
    # bounded VMEM on v7x / v5e-scoped-default).
    if tile_m is None:
        m8 = max(SUBLANE, _round_up(B, SUBLANE))
        tile_m = m8 if m8 <= MAX_TILE_M else MAX_TILE_M
    tile_m = max(SUBLANE, _round_up(tile_m, SUBLANE))
    Mp = _round_up(max(B, tile_m), tile_m)

    x = adjs.reshape(B, N * N).astype(compute_dtype)
    x = jnp.pad(x, ((0, Mp - B), (0, 0)))

    grid = (Mp // tile_m,)
    cbytes = jnp.dtype(compute_dtype).itemsize
    obytes = jnp.dtype(out_dtype).itemsize

    # Explicit VMEM budget: resident weights + double-buffered x/out tiles +
    # f32 intermediates, with 2x slack, clamped to a v7x-safe 48 MiB.
    weight_bytes = (w1p.size + w23p.size + w4p.size) * cbytes + bp.size * 4
    vmem_est = (weight_bytes
                + 2 * tile_m * K * cbytes          # double-buffered x tiles
                + 2 * tile_m * Op * obytes         # double-buffered out tiles
                + 4 * tile_m * max(Hp, Op) * 4)    # f32 activations/accumulators
    vmem_limit = int(min(max(2 * vmem_est + (4 << 20), 24 << 20), 48 << 20))

    flops = 2 * Mp * (K * Hp + 2 * Hp * Hp + Hp * Op)
    bytes_accessed = Mp * K * cbytes + weight_bytes + Mp * Op * obytes

    out = pl.pallas_call(
        functools.partial(gcn_kernel, hp=Hp, op=Op),
        out_shape=jax.ShapeDtypeStruct((Mp, Op), out_dtype),
        grid=grid,
        in_specs=[
            pl.BlockSpec((tile_m, K), lambda i: (i, 0)),        # x: M-tiled
            pl.BlockSpec((K, Hp), lambda i: (0, 0)),            # w1: resident
            pl.BlockSpec((2, Hp, Hp), lambda i: (0, 0, 0)),     # [w2, w3]: resident
            pl.BlockSpec((Hp, Op), lambda i: (0, 0)),           # w4: resident
            pl.BlockSpec((4, Bp_bias), lambda i: (0, 0)),       # biases: resident
        ],
        out_specs=pl.BlockSpec((tile_m, Op), lambda i: (i, 0)),
        compiler_params=pltpu.CompilerParams(
            dimension_semantics=("parallel",),   # megacore / 2-TC sharding on v7x
            vmem_limit_bytes=vmem_limit),
        cost_estimate=pl.CostEstimate(
            flops=flops, transcendentals=0, bytes_accessed=bytes_accessed),
    )(x, w1p, w23p, w4p, bp)

    return out[:B, :Nout].astype(jnp.float32)


def gcn_forward(adj, params, *, compute_dtype=jnp.bfloat16):
    """Single-graph forward matching PyTorch GCN.forward: (N, N) -> (N,)."""
    return gcn_forward_batched(adj[None], params, compute_dtype=compute_dtype)[0]


def gcn_reference(adjs, params, *, compute_dtype=jnp.bfloat16):
    """Pure-JAX reference with identical mixed precision (for verification)."""
    (w1, b1), (w2, b2), (w3, b3), (w4, b4) = params

    def lin(x, w, b):
        return jnp.dot(x.astype(compute_dtype), w.astype(compute_dtype),
                       preferred_element_type=jnp.float32) + b.reshape(1, -1)

    x = adjs.reshape(adjs.shape[0], -1)
    h = jnp.maximum(lin(x, w1, b1), 0.0)
    h = jnp.maximum(lin(h, w2, b2), 0.0)
    h = jnp.maximum(lin(h, w3, b3), 0.0)
    return lin(h, w4, b4)


def init_params(key, N, H):
    """nn.Linear-style init (uniform +-1/sqrt(fan_in)); weights stored (in, out)."""
    def linear(key, fan_in, fan_out):
        kw, kb = jax.random.split(key)
        bound = 1.0 / jnp.sqrt(fan_in)
        w = jax.random.uniform(kw, (fan_in, fan_out), jnp.float32, -bound, bound)
        b = jax.random.uniform(kb, (1, fan_out), jnp.float32, -bound, bound)
        return w, b

    k1, k2, k3, k4 = jax.random.split(key, 4)
    return (
        linear(k1, N * N, H),   # fc1: N*N -> H
        linear(k2, H, H),       # fc2: H -> H
        linear(k3, H, H),       # fc3: H -> H
        linear(k4, H, N),       # fc4: H -> N
    )


if __name__ == "__main__":
    N = 16   # graph size -> input is the (N, N) adjacency, flattened to N*N = 256
    H = 32   # hidden width (padded to 128 lanes inside the kernel)

    key = jax.random.PRNGKey(0)
    k_adj, k_batch, k_params = jax.random.split(key, 3)

    params = init_params(k_params, N, H)

    # --- single-graph path (matches PyTorch forward exactly) ---------------
    adj = jax.random.uniform(k_adj, (N, N), jnp.float32)
    fwd = jax.jit(lambda a: gcn_forward(a, params))
    y = fwd(adj)
    jax.block_until_ready(y)
    assert y.shape == (N,), y.shape
    assert y.dtype == jnp.float32, y.dtype
    y_ref = np.asarray(gcn_reference(adj[None], params)[0])
    np.testing.assert_allclose(np.asarray(y), y_ref, rtol=1e-3, atol=2e-3)

    # --- batched path, multi-step grid (exercises tiling + resident weights) --
    B = 20
    adjs = jax.random.uniform(k_batch, (B, N, N), jnp.float32)
    fwd_b = jax.jit(lambda a: gcn_forward_batched(a, params, tile_m=8))
    yb = fwd_b(adjs)            # grid of 3 steps, weights DMA'd once
    jax.block_until_ready(yb)
    assert yb.shape == (B, N), yb.shape
    yb_ref = np.asarray(gcn_reference(adjs, params))
    np.testing.assert_allclose(np.asarray(yb), yb_ref, rtol=1e-3, atol=2e-3)

    print("KERNEL_OK")
</pallas_src>

<mosaic_0001>
module attributes {stable_mosaic.version = 11 : i64} {
  func.func @gcn_kernel(%arg0: i32, %arg1: memref<8x256xbf16, #tpu.memory_space<vmem>>, %arg2: memref<256x128xbf16, #tpu.memory_space<vmem>>, %arg3: memref<2x128x128xbf16, #tpu.memory_space<vmem>>, %arg4: memref<128x128xbf16, #tpu.memory_space<vmem>>, %arg5: memref<4x128xf32, #tpu.memory_space<vmem>>, %arg6: memref<8x128xf32, #tpu.memory_space<vmem>>) attributes {dimension_semantics = [#tpu.dimension_semantics<parallel>], iteration_bounds = array<i64: 1>, scalar_prefetch = 0 : i64, scratch_operands = 0 : i64, tpu.core_type = #tpu.core_type<tc>, window_params = [{transform_indices = @transform_0, window_bounds = array<i64: 8, 256>}, {pipeline_mode = #tpu.pipeline_mode<synchronous>, transform_indices = @transform_1, window_bounds = array<i64: 256, 128>}, {pipeline_mode = #tpu.pipeline_mode<synchronous>, transform_indices = @transform_2, window_bounds = array<i64: 2, 128, 128>}, {pipeline_mode = #tpu.pipeline_mode<synchronous>, transform_indices = @transform_3, window_bounds = array<i64: 128, 128>}, {pipeline_mode = #tpu.pipeline_mode<synchronous>, transform_indices = @transform_4, window_bounds = array<i64: 4, 128>}, {transform_indices = @transform_5, window_bounds = array<i64: 8, 128>}]} {
    %c0 = arith.constant 0 : index
    %c0_0 = arith.constant 0 : index
    %0 = vector.load %arg5[%c0, %c0_0] : memref<4x128xf32, #tpu.memory_space<vmem>>, vector<4x128xf32>
    %c0_1 = arith.constant 0 : index
    %c0_2 = arith.constant 0 : index
    %1 = vector.load %arg1[%c0_1, %c0_2] : memref<8x256xbf16, #tpu.memory_space<vmem>>, vector<8x256xbf16>
    %c0_3 = arith.constant 0 : index
    %c0_4 = arith.constant 0 : index
    %2 = vector.load %arg2[%c0_3, %c0_4] : memref<256x128xbf16, #tpu.memory_space<vmem>>, vector<256x128xbf16>
    %cst = arith.constant dense<0.000000e+00> : vector<8x128xf32>
    %3 = tpu.matmul %1, %2, %cst {dimension_numbers = #tpu.dot_dimension_numbers<[1], [0], [0], [1], [0, 0, 1, 1], [], []>} : vector<8x256xbf16>, vector<256x128xbf16>, vector<8x128xf32> -> vector<8x128xf32>
    %4 = vector.extract_strided_slice %0 {offsets = [0, 0], sizes = [1, 128], strides = [1, 1]} : vector<4x128xf32> to vector<1x128xf32>
    %5 = vector.broadcast %4 : vector<1x128xf32> to vector<8x128xf32>
    %6 = arith.addf %3, %5 : vector<8x128xf32>
    %cst_5 = arith.constant 0.000000e+00 : f32
    %7 = vector.broadcast %cst_5 : f32 to vector<8x128xf32>
    %8 = arith.maximumf %6, %7 : vector<8x128xf32>
    %9 = arith.truncf %8 : vector<8x128xf32> to vector<8x128xbf16>
    %c0_6 = arith.constant 0 : index
    %c0_7 = arith.constant 0 : index
    %c0_8 = arith.constant 0 : index
    %10 = vector.load %arg3[%c0_6, %c0_7, %c0_8] : memref<2x128x128xbf16, #tpu.memory_space<vmem>>, vector<1x128x128xbf16>
    %11 = vector.shape_cast %10 : vector<1x128x128xbf16> to vector<128x128xbf16>
    %cst_9 = arith.constant dense<0.000000e+00> : vector<8x128xf32>
    %12 = tpu.matmul %9, %11, %cst_9 {dimension_numbers = #tpu.dot_dimension_numbers<[1], [0], [0], [1], [0, 0, 1, 1], [], []>} : vector<8x128xbf16>, vector<128x128xbf16>, vector<8x128xf32> -> vector<8x128xf32>
    %13 = vector.extract_strided_slice %0 {offsets = [1, 0], sizes = [1, 128], strides = [1, 1]} : vector<4x128xf32> to vector<1x128xf32>
    %14 = vector.broadcast %13 : vector<1x128xf32> to vector<8x128xf32>
    %15 = arith.addf %12, %14 : vector<8x128xf32>
    %cst_10 = arith.constant 0.000000e+00 : f32
    %16 = vector.broadcast %cst_10 : f32 to vector<8x128xf32>
    %17 = arith.maximumf %15, %16 : vector<8x128xf32>
    %18 = arith.truncf %17 : vector<8x128xf32> to vector<8x128xbf16>
    %c1 = arith.constant 1 : index
    %c0_11 = arith.constant 0 : index
    %c0_12 = arith.constant 0 : index
    %19 = vector.load %arg3[%c1, %c0_11, %c0_12] : memref<2x128x128xbf16, #tpu.memory_space<vmem>>, vector<1x128x128xbf16>
    %20 = vector.shape_cast %19 : vector<1x128x128xbf16> to vector<128x128xbf16>
    %cst_13 = arith.constant dense<0.000000e+00> : vector<8x128xf32>
    %21 = tpu.matmul %18, %20, %cst_13 {dimension_numbers = #tpu.dot_dimension_numbers<[1], [0], [0], [1], [0, 0, 1, 1], [], []>} : vector<8x128xbf16>, vector<128x128xbf16>, vector<8x128xf32> -> vector<8x128xf32>
    %22 = vector.extract_strided_slice %0 {offsets = [2, 0], sizes = [1, 128], strides = [1, 1]} : vector<4x128xf32> to vector<1x128xf32>
    %23 = vector.broadcast %22 : vector<1x128xf32> to vector<8x128xf32>
    %24 = arith.addf %21, %23 : vector<8x128xf32>
    %cst_14 = arith.constant 0.000000e+00 : f32
    %25 = vector.broadcast %cst_14 : f32 to vector<8x128xf32>
    %26 = arith.maximumf %24, %25 : vector<8x128xf32>
    %27 = arith.truncf %26 : vector<8x128xf32> to vector<8x128xbf16>
    %c0_15 = arith.constant 0 : index
    %c0_16 = arith.constant 0 : index
    %28 = vector.load %arg4[%c0_15, %c0_16] : memref<128x128xbf16, #tpu.memory_space<vmem>>, vector<128x128xbf16>
    %cst_17 = arith.constant dense<0.000000e+00> : vector<8x128xf32>
    %29 = tpu.matmul %27, %28, %cst_17 {dimension_numbers = #tpu.dot_dimension_numbers<[1], [0], [0], [1], [0, 0, 1, 1], [], []>} : vector<8x128xbf16>, vector<128x128xbf16>, vector<8x128xf32> -> vector<8x128xf32>
    %30 = vector.extract_strided_slice %0 {offsets = [3, 0], sizes = [1, 128], strides = [1, 1]} : vector<4x128xf32> to vector<1x128xf32>
    %31 = vector.broadcast %30 : vector<1x128xf32> to vector<8x128xf32>
    %32 = arith.addf %29, %31 : vector<8x128xf32>
    %c0_18 = arith.constant 0 : index
    %c0_19 = arith.constant 0 : index
    %33 = vector.load %arg6[%c0_18, %c0_19] : memref<8x128xf32, #tpu.memory_space<vmem>>, vector<8x128xf32>
    tpu.vector_store %arg6[%c0_18, %c0_19], %32 {strides = array<i32>} : memref<8x128xf32, #tpu.memory_space<vmem>>, vector<8x128xf32>,
    return
  }
  func.func @transform_0(%arg0: i32) -> (i32, i32) {
    %c0_i32 = arith.constant 0 : i32
    %c0_i32_0 = arith.constant 0 : i32
    return %arg0, %c0_i32 : i32, i32
  }
  func.func @transform_1(%arg0: i32) -> (i32, i32) {
    %c0_i32 = arith.constant 0 : i32
    %c0_i32_0 = arith.constant 0 : i32
    %c0_i32_1 = arith.constant 0 : i32
    return %c0_i32, %c0_i32_0 : i32, i32
  }
  func.func @transform_2(%arg0: i32) -> (i32, i32, i32) {
    %c0_i32 = arith.constant 0 : i32
    %c0_i32_0 = arith.constant 0 : i32
    %c0_i32_1 = arith.constant 0 : i32
    %c0_i32_2 = arith.constant 0 : i32
    return %c0_i32, %c0_i32_0, %c0_i32_1 : i32, i32, i32
  }
  func.func @transform_3(%arg0: i32) -> (i32, i32) {
    %c0_i32 = arith.constant 0 : i32
    %c0_i32_0 = arith.constant 0 : i32
    %c0_i32_1 = arith.constant 0 : i32
    return %c0_i32, %c0_i32_0 : i32, i32
  }
  func.func @transform_4(%arg0: i32) -> (i32, i32) {
    %c0_i32 = arith.constant 0 : i32
    %c0_i32_0 = arith.constant 0 : i32
    %c0_i32_1 = arith.constant 0 : i32
    return %c0_i32, %c0_i32_0 : i32, i32
  }
  func.func @transform_5(%arg0: i32) -> (i32, i32) {
    %c0_i32 = arith.constant 0 : i32
    %c0_i32_0 = arith.constant 0 : i32
    return %arg0, %c0_i32 : i32, i32
  }
}

</mosaic_0001>

<bundles_post_ra>
// kernel: _lambda_.1
= control target key start
LH: loop header
LB: loop body
LE: loop exit
PB: predicated region body
PF: predicated region fallthrough
CT: control target
= control target key end

     0   :  { %10 = vsyncpa [#allocation3], 0  ;;  %s944_s0 = inlined_call_operand.vmem [shape: bf16[8,256], index: 0, kind: input, shape index: {}]   ;;  %s945_s1 = inlined_call_operand.hbm [shape: bf16[256,128], index: 1, kind: input, shape index: {}]   ;;  %s946_s2 = inlined_call_operand.hbm [shape: bf16[2,128,128], index: 2, kind: input, shape index: {}]   ;;  %s947_s3 = inlined_call_operand.vmem [shape: bf16[128,128], index: 3, kind: input, shape index: {}]   ;;  %s948_s4 = inlined_call_operand.vmem [shape: f32[4,128], index: 4, kind: input, shape index: {}]   ;;  %s949_s5 = inlined_call_operand.vmem [shape: f32[8,128], index: 5, kind: output, shape index: {}]  }
   0x1   :  { %11 = vsyncpa [#allocation5], 0  ;;  %s815_s18 = smov [#allocation2]   ;;  %s767_s22 = scalar_lea.hbm %s945_s1, 2048 }
   0x2   :  { %s19_s19 = sshll.u32 %s815_s18, 4  ;;  %p768_p0 = scmp.ne.s32.totalorder %s945_s1, %s767_s22  ;;  %s20_s19 = int_to_ptr.vmem [resolvable:$true] %s19_s19 }
   0x3   :  { %p771_p1 = scmp.lt.u32.totalorder %s767_s22, %s945_s1 }
   0x5   :  { %p773_p2 = pnand %p771_p1, %p768_p0 }
   0x7   :  { %776 = shalt.err (!%p773_p2)
}
   0x8   :  { %s777_s27 = scalar_lea.vmem %s20_s19, 2048  ;;  %p782_p4 = scmp.lt.s32.totalorder %s20_s19, %s20_s19 }
   0x9   :  { %p778_p3 = scmp.ne.s32.totalorder %s20_s19, %s777_s27  ;;  %p783_p5 = scmp.lt.s32.totalorder %s777_s27, %s777_s27 }
   0xb   :  { %p784_p6 = por %p783_p5, %p782_p4 }
   0xd   :  { %p785_p7 = pnand %p784_p6, %p778_p3 }
   0xf   :  { %788 = shalt.err (!%p785_p7)
}
  0x10   :  { %s816_s28 = smov 64   ;;  %s817_s29 = smov 4  }
  0x11   :  { %25 = dma.hbm_to_vmem [thread:$0]  %s945_s1, 2048, %s20_s19, [#allocation3], %s816_s28, %s816_s28, %s817_s29  }
  0x12   :  { %s818_s7 = smov [#allocation4]   ;;  %s789_s11 = scalar_lea.hbm %s946_s2, 2048 }
  0x13   :  { %s31_s8 = sshll.u32 %s818_s7, 4  ;;  %p790_p8 = scmp.ne.s32.totalorder %s946_s2, %s789_s11  ;;  %s32_s8 = int_to_ptr.vmem [resolvable:$true] %s31_s8 }
  0x14   :  { %p793_p9 = scmp.lt.u32.totalorder %s789_s11, %s946_s2 }
  0x16   :  { %p795_p10 = pnand %p793_p9, %p790_p8 }
  0x18   :  { %798 = shalt.err (!%p795_p10)
}
  0x19   :  { %s799_s16 = scalar_lea.vmem %s32_s8, 2048  ;;  %p804_p12 = scmp.lt.s32.totalorder %s32_s8, %s32_s8 }
  0x1a   :  { %p800_p11 = scmp.ne.s32.totalorder %s32_s8, %s799_s16  ;;  %p805_p13 = scmp.lt.s32.totalorder %s799_s16, %s799_s16 }
  0x1c   :  { %p806_p0 = por %p805_p13, %p804_p12 }
  0x1e   :  { %p807_p1 = pnand %p806_p0, %p800_p11 }
  0x20   :  { %810 = shalt.err (!%p807_p1)
}
  0x21   :  { %37 = dma.hbm_to_vmem [thread:$0]  %s946_s2, 2048, %s32_s8, [#allocation5], %s816_s28, %s816_s28, %s817_s29  }
  0x22   :  { %811 = dma.done.wait [#allocation3], 2048  }
  0x23   :  { %812 = vsyncadd [#allocation3], 4294965248 }
  0x24   :  { %813 = dma.done.wait [#allocation5], 2048  }
  0x25   :  { %814 = vsyncadd [#allocation5], 4294965248  ;;  %v819_v0 = vmov 0.0   ;;  %v725_v1 = vld [vmem:[#allocation2 + $0x40] sm:$0xff]   ;;  %v727_v3 = vld [vmem:[#allocation2 + $0x48] sm:$0xff]   ;;  %vm820_vm0 = vmmov 0   ;;  %v83_v34 = vlaneseq }
  0x26   :  { %659 = vmatprep.subr.bf16.mxu1 %v819_v0  ;;  %v726_v2 = vld [vmem:[#allocation2] sm:$0xff]   ;;  %610 = vmatprep.subr.bf16.mxu0 %v725_v1  ;;  %v728_v4 = vld [vmem:[#allocation2 + $0x8] sm:$0xff]   ;;  %v729_v5 = vld [vmem:[#allocation2 + $0x50] sm:$0xff]  }
  0x27   :  { %611 = vmatpush3.bf16.msra.mxu0 %v726_v2  ;;  %v730_v6 = vld [vmem:[#allocation2 + $0x10] sm:$0xff]   ;;  %v731_v7 = vld [vmem:[#allocation2 + $0x58] sm:$0xff]   ;;  %v733_v9 = vld [vmem:[#allocation2 + $0x60] sm:$0xff]   ;;  %675 = vmatprep.mubr.msk.bf16.mxu1 %vm820_vm0, %v819_v0  ;;  %v898_v35 = vshrl.u32 %v83_v34, 7 }
  0x28   :  { %612 = vmatprep.subr.bf16.mxu0 %v727_v3  ;;  %v732_v8 = vld [vmem:[#allocation2 + $0x18] sm:$0xff]   ;;  %v734_v10 = vld [vmem:[#allocation2 + $0x20] sm:$0xff]   ;;  %v735_v11 = vld [vmem:[#allocation2 + $0x68] sm:$0xff]  }
  0x29   :  { %v50_v12 = vld [vmem:[%s944_s0] sm:$0xff]  ;;  %v736_v15 = vld [vmem:[#allocation2 + $0x28] sm:$0xff]   ;;  %v737_v16 = vld [vmem:[#allocation2 + $0x70] sm:$0xff]   ;;  %v85_v36 = vsub.s32 0, %v898_v35  ;;  %v250_v55 = vsub.s32 1, %v898_v35  ;;  %v361_v3 = vsub.s32 2, %v898_v35 }
  0x2a   :  { %v569_v13 = vcombine.high %v50_v12, %v50_v12  ;;  %v743_v14 = vld [vmem:[#allocation4] sm:$0xff]   ;;  %v744_v17 = vld [vmem:[#allocation4 + $0x8] sm:$0xff]   ;;  %v738_v18 = vld [vmem:[#allocation2 + $0x30] sm:$0xff]   ;;  %v568_v23 = vcombine.low %v50_v12, %v50_v12  ;;  %v471_v12 = vsub.s32 3, %v898_v35 }
  0x2b   :  { %613 = vmatpush3.bf16.msra.mxu0 %v728_v4  ;;  %660 = vmatpush3.bf16.msra.mxu1 %v743_v14  ;;  %v739_v19 = vld [vmem:[#allocation2 + $0x78] sm:$0xff]   ;;  %v745_v20 = vld [vmem:[#allocation4 + $0x10] sm:$0xff]   ;;  %v747_v24 = vld [vmem:[#allocation4 + $0x20] sm:$0xff]  }
  0x2c   :  { %614 = vmatprep.subr.bf16.mxu0 %v729_v5  ;;  %222 = vmatprep.mubr.bf16.mxu0 %v569_v13  ;;  %v740_v21 = vld [vmem:[#allocation2 + $0x38] sm:$0xff]   ;;  %v748_v25 = vld [vmem:[#allocation4 + $0x28] sm:$0xff]   ;;  %v749_v26 = vld [vmem:[#allocation4 + $0x30] sm:$0xff]  }
  0x2d   :  { %661 = vmatprep.subr.bf16.mxu1 %v819_v0  ;;  %v746_v22 = vld [vmem:[#allocation4 + $0x18] sm:$0xff]   ;;  %v751_v28 = vld [vmem:[#allocation4 + $0x40] sm:$0xff]   ;;  %v752_v29 = vld [vmem:[#allocation4 + $0x48] sm:$0xff]  }
  0x2e   :  { %v750_v27 = vld [vmem:[#allocation4 + $0x38] sm:$0xff]   ;;  %v753_v30 = vld [vmem:[#allocation4 + $0x50] sm:$0xff]   ;;  %v755_v32 = vld [vmem:[#allocation4 + $0x60] sm:$0xff]  }
  0x2f   :  { %615 = vmatpush3.bf16.msra.mxu0 %v730_v6  ;;  %662 = vmatpush3.bf16.msra.mxu1 %v744_v17  ;;  %v754_v31 = vld [vmem:[#allocation4 + $0x58] sm:$0xff]   ;;  %v756_v33 = vld [vmem:[#allocation4 + $0x68] sm:$0xff]   ;;  %v49_v37 = vld [vmem:[%s948_s4] sm:$0xf] }
  0x30   :  { %616 = vmatprep.subr.bf16.mxu0 %v731_v7  ;;  %663 = vmatprep.subr.bf16.mxu1 %v819_v0  ;;  %v86_v39 = vrot.slane %v49_v37, %v85_v36  ;;  %v757_v47 = vld [vmem:[#allocation4 + $0x70] sm:$0xff]   ;;  %v758_v48 = vld [vmem:[#allocation4 + $0x78] sm:$0xff]   ;;  %v759_v49 = vld [vmem:[%s947_s3] sm:$0xff]   ;;  %v251_v56 = vrot.slane %v49_v37, %v250_v55  ;;  %v362_v4 = vrot.slane %v49_v37, %v361_v3 }
  0x31   :  { %v760_v50 = vld [vmem:[%s947_s3 + $0x8] sm:$0xff]   ;;  %v761_v51 = vld [vmem:[%s947_s3 + $0x10] sm:$0xff]   ;;  %v762_v52 = vld [vmem:[%s947_s3 + $0x18] sm:$0xff]   ;;  %v472_v13 = vrot.slane %v49_v37, %v471_v12 }
  0x32   :  { %v763_v53 = vld [vmem:[%s947_s3 + $0x20] sm:$0xff]   ;;  %v764_v54 = vld [vmem:[%s947_s3 + $0x28] sm:$0xff]   ;;  %v765_v1 = vld [vmem:[%s947_s3 + $0x30] sm:$0xff]  }
  0x33   :  { %617 = vmatpush3.bf16.msra.mxu0 %v732_v8  ;;  %664 = vmatpush3.bf16.msra.mxu1 %v745_v20  ;;  %v766_v2 = vld [vmem:[%s947_s3 + $0x38] sm:$0xff]  }
  0x34   :  { %618 = vmatprep.subr.bf16.mxu0 %v733_v9  ;;  %665 = vmatprep.subr.bf16.mxu1 %v819_v0 }
  0x37   :  { %619 = vmatpush3.bf16.msra.mxu0 %v734_v10  ;;  %666 = vmatpush3.bf16.msra.mxu1 %v746_v22 }
  0x38   :  { %620 = vmatprep.subr.bf16.mxu0 %v735_v11  ;;  %667 = vmatprep.subr.bf16.mxu1 %v819_v0 }
  0x3b   :  { %621 = vmatpush3.bf16.msra.mxu0 %v736_v15  ;;  %668 = vmatpush3.bf16.msra.mxu1 %v747_v24 }
  0x3c   :  { %622 = vmatprep.subr.bf16.mxu0 %v737_v16  ;;  %669 = vmatprep.subr.bf16.mxu1 %v819_v0 }
  0x3f   :  { %623 = vmatpush3.bf16.msra.mxu0 %v738_v18  ;;  %670 = vmatpush3.bf16.msra.mxu1 %v748_v25 }
  0x40   :  { %624 = vmatprep.subr.bf16.mxu0 %v739_v19  ;;  %671 = vmatprep.subr.bf16.mxu1 %v819_v0 }
  0x43   :  { %625 = vmatpush3.bf16.msra.mxu0 %v740_v21  ;;  %672 = vmatpush3.bf16.msra.mxu1 %v749_v26 }
  0x44   :  { %679 = vmatprep.subr.bf16.mxu0 %v819_v0  ;;  %673 = vmatprep.subr.bf16.mxu1 %v819_v0 }
  0x46   :  { %223 = vmatmul.mubr.bf16.vlgmr.msra.gmra.mrb[0].mxu0 %v568_v23 }
  0x47   :  { %674 = vmatpush3.bf16.msra.mxu1 %v750_v27  ;;  %695 = vmatprep.mubr.msk.bf16.mxu0 %vm820_vm0, %v819_v0 }
  0x48   :  { %699 = vmatprep.subr.bf16.mxu1 %v819_v0  ;;  %680 = vmatpush3.bf16.msra.mxu0 %v751_v28 }
  0x49   :  { %681 = vmatprep.subr.bf16.mxu0 %v819_v0 }
  0x4c   :  { %682 = vmatpush3.bf16.msra.mxu0 %v752_v29 }
  0x4d   :  { %683 = vmatprep.subr.bf16.mxu0 %v819_v0 }
  0x50   :  { %684 = vmatpush3.bf16.msra.mxu0 %v753_v30 }
  0x51   :  { %685 = vmatprep.subr.bf16.mxu0 %v819_v0 }
  0x54   :  { %686 = vmatpush3.bf16.msra.mxu0 %v754_v31 }
  0x55   :  { %687 = vmatprep.subr.bf16.mxu0 %v819_v0 }
  0x58   :  { %688 = vmatpush3.bf16.msra.mxu0 %v755_v32 }
  0x59   :  { %689 = vmatprep.subr.bf16.mxu0 %v819_v0 }
  0x5c   :  { %690 = vmatpush3.bf16.msra.mxu0 %v756_v33 }
  0x5d   :  { %691 = vmatprep.subr.bf16.mxu0 %v819_v0 }
  0x60   :  { %692 = vmatpush3.bf16.msra.mxu0 %v757_v47 }
  0x61   :  { %693 = vmatprep.subr.bf16.mxu0 %v819_v0 }
  0x64   :  { %694 = vmatpush3.bf16.msra.mxu0 %v758_v48 }
 0x119   :  { %v626_v38 = vpop.f32.mrb[0].mxu0 }
 0x11a   :  { %v627_v40 = vpop.f32.mrb[1].mxu0 }
 0x11b   :  { %v628_v41 = vadd.f32 %v627_v40, %v626_v38  ;;  %v629_v42 = vpop.f32.mrb[2].mxu0 }
 0x11c   :  { %v630_v43 = vpop.f32.mrb[3].mxu0 }
 0x11d   :  { %v225_v44 = vadd.f32 %v628_v41, %v86_v39 }
 0x11f   :  { %v230_v45 = vmax.f32 %v225_v44, 0.0 }
 0x121   :  { %v231_v46 = vpack.c.bf16 %v230_v45, %v230_v45 }
 0x123   :  { %676 = vmatmul.mubr.bf16.vlgmr.msra.gmra.mrb[0].mxu1 %v231_v46 }
 0x124   :  { %715 = vmatprep.mubr.msk.bf16.mxu1 %vm820_vm0, %v819_v0  ;;  %700 = vmatpush3.bf16.msra.mxu1 %v759_v49 }
 0x125   :  { %701 = vmatprep.subr.bf16.mxu1 %v819_v0 }
 0x128   :  { %702 = vmatpush3.bf16.msra.mxu1 %v760_v50 }
 0x129   :  { %703 = vmatprep.subr.bf16.mxu1 %v819_v0 }
 0x12c   :  { %704 = vmatpush3.bf16.msra.mxu1 %v761_v51 }
 0x12d   :  { %705 = vmatprep.subr.bf16.mxu1 %v819_v0 }
 0x130   :  { %706 = vmatpush3.bf16.msra.mxu1 %v762_v52 }
 0x131   :  { %707 = vmatprep.subr.bf16.mxu1 %v819_v0 }
 0x134   :  { %708 = vmatpush3.bf16.msra.mxu1 %v763_v53 }
 0x135   :  { %709 = vmatprep.subr.bf16.mxu1 %v819_v0 }
 0x138   :  { %710 = vmatpush3.bf16.msra.mxu1 %v764_v54 }
 0x139   :  { %711 = vmatprep.subr.bf16.mxu1 %v819_v0 }
 0x13c   :  { %712 = vmatpush3.bf16.msra.mxu1 %v765_v1 }
 0x13d   :  { %713 = vmatprep.subr.bf16.mxu1 %v819_v0 }
 0x140   :  { %714 = vmatpush3.bf16.msra.mxu1 %v766_v2 }
 0x1f6   :  { %v334_v57 = vpop.f32.mrb[0].mxu1 }
 0x1f7   :  { %v335_v58 = vadd.f32 %v334_v57, %v251_v56  ;;  %v677_v59 = vpop.f32.mrb[1].mxu1 }
 0x1f8   :  { %v337_v60 = vpop.f32.mrb[2].mxu1 }
 0x1f9   :  { %v340_v61 = vmax.f32 %v335_v58, 0.0  ;;  %v678_v62 = vpop.f32.mrb[3].mxu1 }
 0x1fb   :  { %v341_v63 = vpack.c.bf16 %v340_v61, %v340_v61 }
 0x1fd   :  { %696 = vmatmul.mubr.bf16.vlgmr.msra.gmra.mrb[4].mxu0 %v341_v63 }
 0x2d0   :  { %v445_v5 = vpop.f32.mrb[4].mxu0 }
 0x2d1   :  { %v446_v6 = vadd.f32 %v445_v5, %v362_v4  ;;  %v697_v7 = vpop.f32.mrb[5].mxu0 }
 0x2d2   :  { %v448_v8 = vpop.f32.mrb[6].mxu0 }
 0x2d3   :  { %v451_v9 = vmax.f32 %v446_v6, 0.0  ;;  %v698_v10 = vpop.f32.mrb[7].mxu0 }
 0x2d5   :  { %v452_v11 = vpack.c.bf16 %v451_v9, %v451_v9 }
 0x2d7   :  { %716 = vmatmul.mubr.bf16.vlgmr.msra.gmra.mrb[4].mxu1 %v452_v11 }
 0x3aa   :  { %v555_v0 = vpop.f32.mrb[4].mxu1 }
 0x3ab   :  { %v556_v14 = vadd.f32 %v555_v0, %v472_v13  ;;  %v717_v15 = vpop.f32.mrb[5].mxu1 }
 0x3ac   :  { %v558_v16 = vpop.f32.mrb[6].mxu1 }
 0x3ad   :  { %561 = vst [vmem:[%s949_s5] sm:$0xff] %v556_v14  ;;  %v718_v17 = vpop.f32.mrb[7].mxu1 }
 0x3ae   :  { %566 = vsyncpa [#allocation3], 1 }
 0x3af   :  { %567 = vsyncpa [#allocation5], 1 }

</bundles_post_ra>
